<compile_context>
chip_gen: v6e
topology: v6e:2x2x1
jax: 0.10.0
libtpu: 0.0.40
codegen_flags: <defaults>
</compile_context>

<pallas_src>
import functools

import jax
import jax.numpy as jnp
from jax.experimental import pallas as pl
from jax.experimental.pallas import tpu as pltpu


def _log_sigmoid(z):
    # Stable log(sigmoid(z)) with a single exp + log1p per element.
    # (The where-based form evaluates both branches: 2 exps + 2 log1ps on the
    #  single EUP slot, which is the saturating unit for the N^2 term.)
    return jnp.minimum(z, 0.0) - jnp.log1p(jnp.exp(-jnp.abs(z)))


def _row_stats_kernel(x_ref, tgt_ref, pos_ref, max_ref, log5_ref, neg_ref):
    x = x_ref[...].astype(jnp.float32)            # (TM, C); cast after load (bf16 ok)
    tgt = tgt_ref[...]                            # (TM, 1) int32
    tm, c = x.shape

    # gather(1, target) as a one-hot masked row-sum (Pallas friendly).
    col = jax.lax.broadcasted_iota(jnp.int32, (tm, c), 1)
    onehot = (col == tgt).astype(jnp.float32)
    pos = jnp.sum(onehot * x, axis=1, keepdims=True)         # (TM, 1)

    # Single row-max pass shared between T=1 softmax and T=5 log-sum-exp.
    row_max = jnp.max(x, axis=1, keepdims=True)              # (TM, 1)
    xm = x - row_max
    e1 = jnp.exp(xm)                                         # reused for softmax(x)
    s1 = jnp.sum(e1, axis=1, keepdims=True)
    e5 = jnp.exp(xm * 0.2)                                   # T=5 derived from T=1 work
    s5 = jnp.sum(e5, axis=1, keepdims=True)
    lse5 = row_max * 0.2 + jnp.log(s5)

    # Gathered log-softmax via the identity log_softmax(x/5)[tgt] = x[tgt]/5 - lse5.
    log5 = pos * 0.2 - lse5

    # fine_tune_score_neg = (softmax(x) * logsigmoid(-x/10)).sum(dim=1)
    # One (exact) reciprocal per row instead of a per-element divide; reuse e1.
    softmax_x = e1 * pl.reciprocal(s1, approx=False)
    neg = jnp.sum(softmax_x * _log_sigmoid(x * (-0.1)), axis=1, keepdims=True)

    pos_ref[...] = pos
    max_ref[...] = row_max
    log5_ref[...] = log5
    neg_ref[...] = neg


def _pos_score_kernel(pos_ref, max_ref, out_ref):
    pos = pos_ref[...]                            # (TM, 1) f32
    maxr = max_ref[...]                           # (1, N)  f32 (lane-major, resident)
    # torch broadcast: pos (N,1) against max_ (N,) -> (N,N); here a (TM, N) tile.
    f = jnp.maximum(maxr - pos, 0.0)
    f = jnp.where(f == 0.0, -1000.0, f)           # masked_softmax's f[f==0] = -1000
    fm = jnp.max(f, axis=1, keepdims=True)
    ef = jnp.exp(f - fm)
    sm = ef * pl.reciprocal(jnp.sum(ef, axis=1, keepdims=True), approx=False)
    ps = (1.0 + sm) * _log_sigmoid(pos * 10.0 - maxr)
    out_ref[...] = jnp.sum(ps, axis=1, keepdims=True)        # per-row partial sums


def _pick_block_rows(n, widest_dim):
    """Row-block size: multiple of 8 dividing n, sized so the (TM, widest_dim)
    f32 temporaries stay well under scoped VMEM (v7x only has 64 MiB physical)."""
    if n % 8 != 0:
        return n                                   # single full block is always legal
    cap = max(8, (4 * 1024 * 1024) // (4 * max(widest_dim, 1)))
    for cand in (512, 256, 128, 64, 32, 16, 8):
        if cand <= cap and n % cand == 0:
            return cand
    return n


_COMPILER_PARAMS = pltpu.CompilerParams(
    # Row blocks are fully independent -> parallel grid axis (v7x: 2 TensorCores).
    dimension_semantics=("parallel",),
    vmem_limit_bytes=32 * 1024 * 1024,
)


def _booster_stats(can_outputs, can_target):
    n, c = can_outputs.shape
    tgt = can_target.reshape(n, 1).astype(jnp.int32)
    tm = _pick_block_rows(n, max(n, c))
    nb = n // tm

    # Pass 1: per-row statistics, streamed over row blocks (pipelined DMA).
    # No HBM-side f32 cast of can_outputs: bf16 sources stream at half the bytes.
    pos_col, max_col, log5_col, neg_col = pl.pallas_call(
        _row_stats_kernel,
        grid=(nb,),
        in_specs=[
            pl.BlockSpec((tm, c), lambda i: (i, 0)),
            pl.BlockSpec((tm, 1), lambda i: (i, 0)),
        ],
        out_specs=(
            pl.BlockSpec((tm, 1), lambda i: (i, 0)),
            pl.BlockSpec((tm, 1), lambda i: (i, 0)),
            pl.BlockSpec((tm, 1), lambda i: (i, 0)),
            pl.BlockSpec((tm, 1), lambda i: (i, 0)),
        ),
        out_shape=(
            jax.ShapeDtypeStruct((n, 1), jnp.float32),
            jax.ShapeDtypeStruct((n, 1), jnp.float32),
            jax.ShapeDtypeStruct((n, 1), jnp.float32),
            jax.ShapeDtypeStruct((n, 1), jnp.float32),
        ),
        compiler_params=_COMPILER_PARAMS,
    )(can_outputs, tgt)

    # Lane-major copy of max_ for the (TM, N) broadcast of the second pass.
    max_lane = max_col.reshape(1, n)

    # Pass 2: the N x N fine_tune_score_pos term, tiled over rows of pos.
    pos_rows = pl.pallas_call(
        _pos_score_kernel,
        grid=(nb,),
        in_specs=[
            pl.BlockSpec((tm, 1), lambda i: (i, 0)),
            pl.BlockSpec((1, n), lambda i: (0, 0)),   # resident across the grid
        ],
        out_specs=pl.BlockSpec((tm, 1), lambda i: (i, 0)),
        out_shape=jax.ShapeDtypeStruct((n, 1), jnp.float32),
        compiler_params=_COMPILER_PARAMS,
    )(pos_col, max_lane)

    inv_n = 1.0 / float(n)                         # multiply, don't divide
    mean_log5 = jnp.sum(log5_col) * inv_n
    mean_neg = jnp.sum(neg_col) * inv_n
    mean_pos = jnp.sum(pos_rows) * (inv_n * inv_n)
    return mean_log5, mean_neg, mean_pos


@functools.partial(jax.jit, static_argnames=("type_",))
def booster_loss(can_outputs, can_target, type_):
    mean_log5, mean_neg, mean_pos = _booster_stats(can_outputs, can_target)

    if type_ == "HyTE":
        # fine_tune_score_pos is computed but never added in the torch code.
        return -0.1 * mean_neg
    if type_ == "HyTE_ya":
        return -mean_neg - mean_pos
    if type_ == "TNT":
        # torch returns shape (1,) here (mean(dim=0) of an (N,1) tensor).
        return jnp.reshape(0.1 * (-mean_log5) - mean_neg - mean_pos, (1,))
    if type_ == "DE":
        return -mean_pos - mean_neg
    if type_ == "TA":
        return -mean_pos
    if type_ == "Timeplex":
        return -mean_pos
    if type_ == "TeRo":
        # torch branch leaves result_loss = 0 (all other work is dead code).
        return jnp.float32(0.0)
    raise ValueError(f"unknown type_: {type_}")


def _reference(can_outputs, can_target, type_):
    """Pure-JAX replica of the torch forward, for validation."""
    x = can_outputs.astype(jnp.float32)
    tgt = can_target.reshape(-1, 1).astype(jnp.int32)
    pos = jnp.take_along_axis(x, tgt, axis=1)                               # (N,1)
    log5 = jnp.take_along_axis(jax.nn.log_softmax(x / 5.0, axis=1), tgt, axis=1)
    neg = jnp.sum(jax.nn.softmax(x, axis=1) * jax.nn.log_sigmoid(-x / 10.0), axis=1)
    max_ = jnp.max(x, axis=1)
    f = jnp.maximum(max_[None, :] - pos, 0.0)
    f = jnp.where(f == 0.0, -1000.0, f)
    sm = jax.nn.softmax(f, axis=1)
    pos_score = (1.0 + sm) * jax.nn.log_sigmoid(pos * 10.0 - max_[None, :])
    if type_ == "HyTE":
        return -0.1 * jnp.mean(neg)
    if type_ == "HyTE_ya":
        return -jnp.mean(neg) - jnp.mean(pos_score)
    if type_ == "TNT":
        return jnp.reshape(0.1 * jnp.mean(-log5) - jnp.mean(neg) - jnp.mean(pos_score), (1,))
    if type_ == "DE":
        return -jnp.mean(pos_score) - jnp.mean(neg)
    if type_ in ("TA", "Timeplex"):
        return -jnp.mean(pos_score)
    return jnp.float32(0.0)


if __name__ == "__main__":
    key = jax.random.PRNGKey(0)
    k1, k2 = jax.random.split(key)
    N, C = 8, 16  # batch of 8 examples, 16 candidate scores each
    can_outputs = 3.0 * jax.random.normal(k1, (N, C), dtype=jnp.float32)
    can_target = jax.random.randint(k2, (N,), 0, C, dtype=jnp.int32)

    for type_ in ("TNT", "HyTE", "HyTE_ya", "DE", "TA", "Timeplex", "TeRo"):
        out = booster_loss(can_outputs, can_target, type_)
        out = jax.block_until_ready(out)
        ref = _reference(can_outputs, can_target, type_)
        assert jnp.allclose(out, ref, atol=1e-4, rtol=1e-4), (type_, out, ref)

    print("KERNEL_OK")
</pallas_src>

<mosaic_0001>
module attributes {stable_mosaic.version = 11 : i64} {
  func.func @_row_stats_kernel(%arg0: i32, %arg1: memref<8x16xf32, #tpu.memory_space<vmem>>, %arg2: memref<8x1xi32, #tpu.memory_space<vmem>>, %arg3: memref<8x1xf32, #tpu.memory_space<vmem>>, %arg4: memref<8x1xf32, #tpu.memory_space<vmem>>, %arg5: memref<8x1xf32, #tpu.memory_space<vmem>>, %arg6: memref<8x1xf32, #tpu.memory_space<vmem>>) attributes {dimension_semantics = [#tpu.dimension_semantics<parallel>], iteration_bounds = array<i64: 1>, scalar_prefetch = 0 : i64, scratch_operands = 0 : i64, tpu.core_type = #tpu.core_type<tc>, window_params = [{transform_indices = @transform_0, window_bounds = array<i64: 8, 16>}, {transform_indices = @transform_1, window_bounds = array<i64: 8, 1>}, {transform_indices = @transform_2, window_bounds = array<i64: 8, 1>}, {transform_indices = @transform_3, window_bounds = array<i64: 8, 1>}, {transform_indices = @transform_4, window_bounds = array<i64: 8, 1>}, {transform_indices = @transform_5, window_bounds = array<i64: 8, 1>}]} {
    %c0 = arith.constant 0 : index
    %c0_0 = arith.constant 0 : index
    %0 = vector.load %arg1[%c0, %c0_0] : memref<8x16xf32, #tpu.memory_space<vmem>>, vector<8x16xf32>
    %c0_1 = arith.constant 0 : index
    %c0_2 = arith.constant 0 : index
    %1 = vector.load %arg2[%c0_1, %c0_2] : memref<8x1xi32, #tpu.memory_space<vmem>>, vector<8x1xi32>
    %2 = tpu.iota {dimensions = array<i32: 1>} : vector<8x16xi32>
    %3 = vector.broadcast %1 : vector<8x1xi32> to vector<8x16xi32>
    %4 = arith.cmpi eq, %2, %3 : vector<8x16xi32>
    %5 = arith.extui %4 : vector<8x16xi1> to vector<8x16xi32>
    %6 = arith.sitofp %5 : vector<8x16xi32> to vector<8x16xf32>
    %7 = arith.mulf %6, %0 : vector<8x16xf32>
    %cst = arith.constant dense<0.000000e+00> : vector<8xf32>
    %8 = vector.multi_reduction <add>, %7, %cst [1] : vector<8x16xf32> to vector<8xf32>
    %9 = vector.shape_cast %8 : vector<8xf32> to vector<8x1xf32>
    %cst_3 = arith.constant dense<0xFF800000> : vector<8xf32>
    %10 = vector.multi_reduction <maximumf>, %0, %cst_3 [1] : vector<8x16xf32> to vector<8xf32>
    %11 = vector.shape_cast %10 : vector<8xf32> to vector<8x1xf32>
    %12 = vector.broadcast %11 : vector<8x1xf32> to vector<8x16xf32>
    %13 = arith.subf %0, %12 : vector<8x16xf32>
    %14 = math.exp %13 : vector<8x16xf32>
    %cst_4 = arith.constant dense<0.000000e+00> : vector<8xf32>
    %15 = vector.multi_reduction <add>, %14, %cst_4 [1] : vector<8x16xf32> to vector<8xf32>
    %16 = vector.shape_cast %15 : vector<8xf32> to vector<8x1xf32>
    %cst_5 = arith.constant 2.000000e-01 : f32
    %17 = vector.broadcast %cst_5 : f32 to vector<8x16xf32>
    %18 = arith.mulf %13, %17 : vector<8x16xf32>
    %19 = math.exp %18 : vector<8x16xf32>
    %cst_6 = arith.constant dense<0.000000e+00> : vector<8xf32>
    %20 = vector.multi_reduction <add>, %19, %cst_6 [1] : vector<8x16xf32> to vector<8xf32>
    %21 = vector.shape_cast %20 : vector<8xf32> to vector<8x1xf32>
    %cst_7 = arith.constant 2.000000e-01 : f32
    %22 = vector.broadcast %cst_7 : f32 to vector<8x1xf32>
    %23 = arith.mulf %11, %22 : vector<8x1xf32>
    %24 = math.log %21 : vector<8x1xf32>
    %25 = arith.addf %23, %24 : vector<8x1xf32>
    %cst_8 = arith.constant 2.000000e-01 : f32
    %26 = vector.broadcast %cst_8 : f32 to vector<8x1xf32>
    %27 = arith.mulf %9, %26 : vector<8x1xf32>
    %28 = arith.subf %27, %25 : vector<8x1xf32>
    %29 = tpu.reciprocal %16 : vector<8x1xf32> -> vector<8x1xf32>
    %30 = vector.broadcast %29 : vector<8x1xf32> to vector<8x16xf32>
    %31 = arith.mulf %14, %30 : vector<8x16xf32>
    %cst_9 = arith.constant -1.000000e-01 : f32
    %32 = vector.broadcast %cst_9 : f32 to vector<8x16xf32>
    %33 = arith.mulf %0, %32 : vector<8x16xf32>
    %cst_10 = arith.constant 0.000000e+00 : f32
    %34 = vector.broadcast %cst_10 : f32 to vector<8x16xf32>
    %35 = arith.minimumf %33, %34 : vector<8x16xf32>
    %36 = math.absf %33 : vector<8x16xf32>
    %cst_11 = arith.constant 0.000000e+00 : f32
    %37 = vector.broadcast %cst_11 : f32 to vector<8x16xf32>
    %38 = arith.subf %37, %36 : vector<8x16xf32>
    %39 = math.exp %38 : vector<8x16xf32>
    %40 = math.log1p %39 : vector<8x16xf32>
    %41 = arith.subf %35, %40 : vector<8x16xf32>
    %42 = arith.mulf %31, %41 : vector<8x16xf32>
    %cst_12 = arith.constant dense<0.000000e+00> : vector<8xf32>
    %43 = vector.multi_reduction <add>, %42, %cst_12 [1] : vector<8x16xf32> to vector<8xf32>
    %44 = vector.shape_cast %43 : vector<8xf32> to vector<8x1xf32>
    %c0_13 = arith.constant 0 : index
    %c0_14 = arith.constant 0 : index
    %45 = vector.load %arg3[%c0_13, %c0_14] : memref<8x1xf32, #tpu.memory_space<vmem>>, vector<8x1xf32>
    tpu.vector_store %arg3[%c0_13, %c0_14], %9 {strides = array<i32>} : memref<8x1xf32, #tpu.memory_space<vmem>>, vector<8x1xf32>,
    %c0_15 = arith.constant 0 : index
    %c0_16 = arith.constant 0 : index
    %46 = vector.load %arg4[%c0_15, %c0_16] : memref<8x1xf32, #tpu.memory_space<vmem>>, vector<8x1xf32>
    tpu.vector_store %arg4[%c0_15, %c0_16], %11 {strides = array<i32>} : memref<8x1xf32, #tpu.memory_space<vmem>>, vector<8x1xf32>,
    %c0_17 = arith.constant 0 : index
    %c0_18 = arith.constant 0 : index
    %47 = vector.load %arg5[%c0_17, %c0_18] : memref<8x1xf32, #tpu.memory_space<vmem>>, vector<8x1xf32>
    tpu.vector_store %arg5[%c0_17, %c0_18], %28 {strides = array<i32>} : memref<8x1xf32, #tpu.memory_space<vmem>>, vector<8x1xf32>,
    %c0_19 = arith.constant 0 : index
    %c0_20 = arith.constant 0 : index
    %48 = vector.load %arg6[%c0_19, %c0_20] : memref<8x1xf32, #tpu.memory_space<vmem>>, vector<8x1xf32>
    tpu.vector_store %arg6[%c0_19, %c0_20], %44 {strides = array<i32>} : memref<8x1xf32, #tpu.memory_space<vmem>>, vector<8x1xf32>,
    return
  }
  func.func @transform_0(%arg0: i32) -> (i32, i32) {
    %c0_i32 = arith.constant 0 : i32
    %c0_i32_0 = arith.constant 0 : i32
    return %arg0, %c0_i32 : i32, i32
  }
  func.func @transform_1(%arg0: i32) -> (i32, i32) {
    %c0_i32 = arith.constant 0 : i32
    %c0_i32_0 = arith.constant 0 : i32
    return %arg0, %c0_i32 : i32, i32
  }
  func.func @transform_2(%arg0: i32) -> (i32, i32) {
    %c0_i32 = arith.constant 0 : i32
    %c0_i32_0 = arith.constant 0 : i32
    return %arg0, %c0_i32 : i32, i32
  }
  func.func @transform_3(%arg0: i32) -> (i32, i32) {
    %c0_i32 = arith.constant 0 : i32
    %c0_i32_0 = arith.constant 0 : i32
    return %arg0, %c0_i32 : i32, i32
  }
  func.func @transform_4(%arg0: i32) -> (i32, i32) {
    %c0_i32 = arith.constant 0 : i32
    %c0_i32_0 = arith.constant 0 : i32
    return %arg0, %c0_i32 : i32, i32
  }
  func.func @transform_5(%arg0: i32) -> (i32, i32) {
    %c0_i32 = arith.constant 0 : i32
    %c0_i32_0 = arith.constant 0 : i32
    return %arg0, %c0_i32 : i32, i32
  }
}

module attributes {stable_mosaic.version = 11 : i64} {
  func.func @_pos_score_kernel(%arg0: i32, %arg1: memref<8x1xf32, #tpu.memory_space<vmem>>, %arg2: memref<1x8xf32, #tpu.memory_space<vmem>>, %arg3: memref<8x1xf32, #tpu.memory_space<vmem>>) attributes {dimension_semantics = [#tpu.dimension_semantics<parallel>], iteration_bounds = array<i64: 1>, scalar_prefetch = 0 : i64, scratch_operands = 0 : i64, tpu.core_type = #tpu.core_type<tc>, window_params = [{transform_indices = @transform_0, window_bounds = array<i64: 8, 1>}, {pipeline_mode = #tpu.pipeline_mode<synchronous>, transform_indices = @transform_1, window_bounds = array<i64: 1, 8>}, {transform_indices = @transform_2, window_bounds = array<i64: 8, 1>}]} {
    %c0 = arith.constant 0 : index
    %c0_0 = arith.constant 0 : index
    %0 = vector.load %arg1[%c0, %c0_0] : memref<8x1xf32, #tpu.memory_space<vmem>>, vector<8x1xf32>
    %c0_1 = arith.constant 0 : index
    %c0_2 = arith.constant 0 : index
    %1 = vector.load %arg2[%c0_1, %c0_2] : memref<1x8xf32, #tpu.memory_space<vmem>>, vector<1x8xf32>
    %2 = vector.broadcast %1 : vector<1x8xf32> to vector<8x8xf32>
    %3 = vector.broadcast %0 : vector<8x1xf32> to vector<8x8xf32>
    %4 = arith.subf %2, %3 : vector<8x8xf32>
    %cst = arith.constant 0.000000e+00 : f32
    %5 = vector.broadcast %cst : f32 to vector<8x8xf32>
    %6 = arith.maximumf %4, %5 : vector<8x8xf32>
    %cst_3 = arith.constant 0.000000e+00 : f32
    %7 = vector.broadcast %cst_3 : f32 to vector<8x8xf32>
    %8 = arith.cmpf oeq, %6, %7 : vector<8x8xf32>
    %cst_4 = arith.constant -1.000000e+03 : f32
    %9 = vector.broadcast %cst_4 : f32 to vector<8x8xf32>
    %10 = arith.select %8, %9, %6 : vector<8x8xi1>, vector<8x8xf32>
    %cst_5 = arith.constant dense<0xFF800000> : vector<8xf32>
    %11 = vector.multi_reduction <maximumf>, %10, %cst_5 [1] : vector<8x8xf32> to vector<8xf32>
    %12 = vector.shape_cast %11 : vector<8xf32> to vector<8x1xf32>
    %13 = vector.broadcast %12 : vector<8x1xf32> to vector<8x8xf32>
    %14 = arith.subf %10, %13 : vector<8x8xf32>
    %15 = math.exp %14 : vector<8x8xf32>
    %cst_6 = arith.constant dense<0.000000e+00> : vector<8xf32>
    %16 = vector.multi_reduction <add>, %15, %cst_6 [1] : vector<8x8xf32> to vector<8xf32>
    %17 = vector.shape_cast %16 : vector<8xf32> to vector<8x1xf32>
    %18 = tpu.reciprocal %17 : vector<8x1xf32> -> vector<8x1xf32>
    %19 = vector.broadcast %18 : vector<8x1xf32> to vector<8x8xf32>
    %20 = arith.mulf %15, %19 : vector<8x8xf32>
    %cst_7 = arith.constant 1.000000e+00 : f32
    %21 = vector.broadcast %cst_7 : f32 to vector<8x8xf32>
    %22 = arith.addf %21, %20 : vector<8x8xf32>
    %cst_8 = arith.constant 1.000000e+01 : f32
    %23 = vector.broadcast %cst_8 : f32 to vector<8x1xf32>
    %24 = arith.mulf %0, %23 : vector<8x1xf32>
    %25 = vector.broadcast %24 : vector<8x1xf32> to vector<8x8xf32>
    %26 = vector.broadcast %1 : vector<1x8xf32> to vector<8x8xf32>
    %27 = arith.subf %25, %26 : vector<8x8xf32>
    %cst_9 = arith.constant 0.000000e+00 : f32
    %28 = vector.broadcast %cst_9 : f32 to vector<8x8xf32>
    %29 = arith.minimumf %27, %28 : vector<8x8xf32>
    %30 = math.absf %27 : vector<8x8xf32>
    %cst_10 = arith.constant 0.000000e+00 : f32
    %31 = vector.broadcast %cst_10 : f32 to vector<8x8xf32>
    %32 = arith.subf %31, %30 : vector<8x8xf32>
    %33 = math.exp %32 : vector<8x8xf32>
    %34 = math.log1p %33 : vector<8x8xf32>
    %35 = arith.subf %29, %34 : vector<8x8xf32>
    %36 = arith.mulf %22, %35 : vector<8x8xf32>
    %cst_11 = arith.constant dense<0.000000e+00> : vector<8xf32>
    %37 = vector.multi_reduction <add>, %36, %cst_11 [1] : vector<8x8xf32> to vector<8xf32>
    %38 = vector.shape_cast %37 : vector<8xf32> to vector<8x1xf32>
    %c0_12 = arith.constant 0 : index
    %c0_13 = arith.constant 0 : index
    %39 = vector.load %arg3[%c0_12, %c0_13] : memref<8x1xf32, #tpu.memory_space<vmem>>, vector<8x1xf32>
    tpu.vector_store %arg3[%c0_12, %c0_13], %38 {strides = array<i32>} : memref<8x1xf32, #tpu.memory_space<vmem>>, vector<8x1xf32>,
    return
  }
  func.func @transform_0(%arg0: i32) -> (i32, i32) {
    %c0_i32 = arith.constant 0 : i32
    %c0_i32_0 = arith.constant 0 : i32
    return %arg0, %c0_i32 : i32, i32
  }
  func.func @transform_1(%arg0: i32) -> (i32, i32) {
    %c0_i32 = arith.constant 0 : i32
    %c0_i32_0 = arith.constant 0 : i32
    %c0_i32_1 = arith.constant 0 : i32
    return %c0_i32, %c0_i32_0 : i32, i32
  }
  func.func @transform_2(%arg0: i32) -> (i32, i32) {
    %c0_i32 = arith.constant 0 : i32
    %c0_i32_0 = arith.constant 0 : i32
    return %arg0, %c0_i32 : i32, i32
  }
}

</mosaic_0001>

<bundles_post_ra>
// kernel: booster_loss.3
= control target key start
LH: loop header
LB: loop body
LE: loop exit
PB: predicated region body
PF: predicated region fallthrough
CT: control target
= control target key end

     0   :  { %v85_v0 = vmov 0   ;;  %vm28_vm0 = vcmask 64512   ;;  %vm67_vm3 = vcmask 7168   ;;  %s113_s0 = inlined_call_operand.vmem [shape: f32[8,1], index: 0, kind: input, shape index: {}]   ;;  %s114_s1 = inlined_call_operand.vmem [shape: f32[1,8], index: 1, kind: input, shape index: {}]   ;;  %s115_s2 = inlined_call_operand.vmem [shape: f32[8,1], index: 2, kind: output, shape index: {}]  }
   0x1   :  { %75 = vset.pattern.permute.xlu0 %v85_v0  ;;  %v11_v1 = vld [vmem:[%s113_s0] sm:$0xff]  ;;  %76 = vset.pattern.permute.xlu1 %v85_v0 }
   0x2   :  { %21 = vperm.xlu0 %75, %v11_v1   ;;  %v41_v2 = vmul.f32 10.0, %v11_v1  ;;  %v73_v3 = vld [vmem:[%s114_s1] ss:$0 sm:$0xff] }
   0x4   :  { %44 = vperm.xlu1 %76, %v41_v2  }
  0x7d   :  { %v22_v4 = vpop.permute.xlu0 %21 }
  0x7e   :  { %v24_v5 = vsub.f32 %v73_v3, %v22_v4 }
  0x7f   :  { %v45_v14 = vpop.permute.xlu1 %44 }
  0x80   :  { %v25_v6 = vmax.f32 %v24_v5, 0.0  ;;  %v47_v15 = vsub.f32 %v45_v14, %v73_v3 }
  0x82   :  { %vm26_vm1 = vcmp.eq.f32.partialorder %v25_v6, 0.0  ;;  %v49_v16 = vand.u32 2147483647, %v47_v15  ;;  %v48_v28 = vmin.f32 %v47_v15, 0.0 }
  0x83   :  { %v27_v7 = vsel %vm26_vm1, -1000.0, %v25_v6 }
  0x84   :  { %v29_v8 = vsel %vm28_vm0, %v27_v7, -inf  ;;  %v50_v17 = vsub.f32 0.0, %v49_v16 }
  0x85   :  { %30 = vmax.xlane.f32.xlu0 %v29_v8 }
  0x86   :  { %v51_v18 = vmul.f32 1.442695, %v50_v17 }
 0x10e   :  { %v31_v9 = vpop.xlane.xlu0 %30 }
 0x10f   :  { %v32_v10 = vsub.f32 %v27_v7, %v31_v9 }
 0x111   :  { %v33_v11 = vmul.f32 1.442695, %v32_v10 }
 0x113   :  { %77 = vpow2.f32 %v33_v11 }
 0x114   :  { %79 = vpow2.f32 %v51_v18 }
 0x120   :  { %v78_v12 = vpop.eup %77 }
 0x121   :  { %v35_v13 = vsel %vm28_vm0, %v78_v12, 0.0  ;;  %v80_v19 = vpop.eup %79 }
 0x122   :  { %36 = vadd.xlane.f32.xlu1 %v35_v13  ;;  %v53_v20 = vadd.f32 1.0, %v80_v19  ;;  %v56_v22 = vmul.f32 -0.5, %v80_v19  ;;  %v59_v25 = vand.u32 2147483647, %v80_v19 }
 0x124   :  { %81 = vlog2.f32 %v53_v20  ;;  %v57_v23 = vadd.f32 1.0, %v56_v22  ;;  %vm60_vm2 = vcmp.lt.f32.partialorder %v59_v25, 0.0004427343 }
 0x126   :  { %v58_v27 = vmul.f32 %v80_v19, %v57_v23 }
 0x131   :  { %v82_v24 = vpop.eup %81 }
 0x132   :  { %v55_v26 = vmul.f32 0.6931472, %v82_v24 }
 0x134   :  { %v61_v30 = vsel %vm60_vm2, %v58_v27, %v55_v26 }
 0x135   :  { %v62_v33 = vsub.f32 %v48_v28, %v61_v30 }
 0x1ab   :  { %v37_v21 = vpop.xlane.xlu1 %36 }
 0x1ac   :  { %83 = vrcp.f32 %v37_v21 }
 0x1b9   :  { %v84_v29 = vpop.eup %83 }
 0x1ba   :  { %v39_v31 = vmul.f32 %v84_v29, %v78_v12 }
 0x1bc   :  { %v40_v32 = vadd.f32 1.0, %v39_v31 }
 0x1be   :  { %v63_v34 = vmul.f32 %v62_v33, %v40_v32 }
 0x1c0   :  { %v64_v35 = vsel %vm28_vm0, %v63_v34, 0.0 }
 0x1c1   :  { %65 = vadd.xlane.f32.xlu0 %v64_v35 }
 0x24a   :  { %v66_v36 = vpop.xlane.xlu0 %65 }
 0x24b   :  { %68 = vst.msk [vmem:[%s115_s2] sm:$0xff] %vm67_vm3, %v66_v36 }

// kernel: booster_loss.2
= control target key start
LH: loop header
LB: loop body
LE: loop exit
PB: predicated region body
PF: predicated region fallthrough
CT: control target
= control target key end

     0   :  { %vm26_vm0 = vcmask 130048   ;;  %v111_v1 = vmov 0   ;;  %vm73_vm1 = vcmask 7168   ;;  %v17_v8 = vlaneseq  ;;  %s170_s0 = inlined_call_operand.vmem [shape: f32[8,16], index: 0, kind: input, shape index: {}]   ;;  %s171_s1 = inlined_call_operand.vmem [shape: s32[8,1], index: 1, kind: input, shape index: {}]   ;;  %s172_s3 = inlined_call_operand.vmem [shape: f32[8,1], index: 3, kind: output, shape index: {1}]   ;;  %s173_s2 = inlined_call_operand.vmem [shape: f32[8,1], index: 2, kind: output, shape index: {0}]   ;;  %s174_s4 = inlined_call_operand.vmem [shape: f32[8,1], index: 4, kind: output, shape index: {2}]   ;;  %s175_s5 = inlined_call_operand.vmem [shape: f32[8,1], index: 5, kind: output, shape index: {3}]  }
   0x1   :  { %v15_v0 = vld [vmem:[%s170_s0] sm:$0xff]  ;;  %97 = vset.pattern.permute.xlu1 %v111_v1  ;;  %98 = vset.pattern.permute.xlu0 %v111_v1  ;;  %v112_v12 = vmov 0.0  }
   0x2   :  { %v16_v2 = vld [vmem:[%s171_s1] sm:$0xff]  ;;  %v30_v3 = vsel %vm26_vm0, %v15_v0, -inf  ;;  %v18_v10 = vand.u32 127, %v17_v8  ;;  %v53_v20 = vmul.f32 -0.1, %v15_v0 }
   0x3   :  { %20 = vperm.xlu1 %97, %v16_v2   ;;  %31 = vmax.xlane.f32.xlu0 %v30_v3 }
   0x4   :  { %v55_v21 = vand.u32 2147483647, %v53_v20  ;;  %v54_v35 = vmin.f32 %v53_v20, 0.0 }
   0x6   :  { %v56_v22 = vsub.f32 0.0, %v55_v21 }
   0x8   :  { %v57_v23 = vmul.f32 1.442695, %v56_v22 }
  0x7e   :  { %v21_v11 = vpop.permute.xlu1 %20 }
  0x7f   :  { %vm22_vm2 = vcmp.eq.s32.totalorder %v18_v10, %v21_v11 }
  0x80   :  { %v94_v13 = vsel %vm22_vm2, 1.0, %v112_v12 }
  0x81   :  { %v25_v14 = vmul.f32 %v94_v13, %v15_v0 }
  0x83   :  { %v27_v19 = vsel %vm26_vm0, %v25_v14, 0.0 }
  0x8c   :  { %v32_v4 = vpop.xlane.xlu0 %31 }
  0x8d   :  { %v33_v5 = vsub.f32 %v15_v0, %v32_v4  ;;  %75 = vst.msk [vmem:[%s172_s3] sm:$0xff] %vm73_vm1, %v32_v4  ;;  %v45_v41 = vmul.f32 0.2, %v32_v4 }
  0x8f   :  { %v34_v6 = vmul.f32 1.442695, %v33_v5  ;;  %v39_v7 = vmul.f32 0.2, %v33_v5 }
  0x91   :  { %99 = vpow2.f32 %v34_v6  ;;  %v40_v9 = vmul.f32 1.442695, %v39_v7 }
  0x93   :  { %101 = vpow2.f32 %v40_v9 }
  0x94   :  { %103 = vpow2.f32 %v57_v23 }
  0x9e   :  { %v100_v15 = vpop.eup %99 }
  0x9f   :  { %v36_v16 = vsel %vm26_vm0, %v100_v15, 0.0 }
  0xa0   :  { %v102_v17 = vpop.eup %101  ;;  %37 = vadd.xlane.f32.xlu0 %v36_v16 }
  0xa1   :  { %v42_v18 = vsel %vm26_vm0, %v102_v17, 0.0  ;;  %v104_v24 = vpop.eup %103 }
  0xa2   :  { %43 = vadd.xlane.f32.xlu1 %v42_v18  ;;  %v59_v25 = vadd.f32 1.0, %v104_v24  ;;  %v62_v26 = vmul.f32 -0.5, %v104_v24  ;;  %v65_v31 = vand.u32 2147483647, %v104_v24 }
  0xa4   :  { %28 = vadd.xlane.f32.xlu0 %v27_v19  ;;  %105 = vlog2.f32 %v59_v25  ;;  %v63_v29 = vadd.f32 1.0, %v62_v26  ;;  %vm66_vm3 = vcmp.lt.f32.partialorder %v65_v31, 0.0004427343 }
  0xa6   :  { %v64_v34 = vmul.f32 %v104_v24, %v63_v29 }
  0xb1   :  { %v106_v30 = vpop.eup %105 }
  0xb2   :  { %v61_v33 = vmul.f32 0.6931472, %v106_v30 }
  0xb4   :  { %v67_v36 = vsel %vm66_vm3, %v64_v34, %v61_v33 }
  0xb5   :  { %v68_v37 = vsub.f32 %v54_v35, %v67_v36 }
 0x129   :  { %v38_v27 = vpop.xlane.xlu0 %37 }
 0x12a   :  { %107 = vrcp.f32 %v38_v27 }
 0x12b   :  { %v44_v28 = vpop.xlane.xlu1 %43 }
 0x12c   :  { %109 = vlog2.f32 %v44_v28 }
 0x12d   :  { %v29_v32 = vpop.xlane.xlu0 %28 }
 0x12e   :  { %74 = vst.msk [vmem:[%s173_s2] sm:$0xff] %vm73_vm1, %v29_v32  ;;  %v49_v43 = vmul.f32 0.2, %v29_v32 }
 0x137   :  { %v108_v38 = vpop.eup %107 }
 0x138   :  { %v52_v39 = vmul.f32 %v108_v38, %v100_v15 }
 0x139   :  { %v110_v40 = vpop.eup %109 }
 0x13a   :  { %v47_v42 = vmul.f32 0.6931472, %v110_v40  ;;  %v69_v44 = vmul.f32 %v68_v37, %v52_v39 }
 0x13c   :  { %v48_v45 = vadd.f32 %v47_v42, %v45_v41  ;;  %v70_v46 = vsel %vm26_vm0, %v69_v44, 0.0 }
 0x13d   :  { %71 = vadd.xlane.f32.xlu0 %v70_v46 }
 0x13e   :  { %v50_v47 = vsub.f32 %v49_v43, %v48_v45 }
 0x140   :  { %76 = vst.msk [vmem:[%s174_s4] sm:$0xff] %vm73_vm1, %v50_v47 }
 0x1c6   :  { %v72_v48 = vpop.xlane.xlu0 %71 }
 0x1c7   :  { %77 = vst.msk [vmem:[%s175_s5] sm:$0xff] %vm73_vm1, %v72_v48 }

</bundles_post_ra>
